<compile_context>
chip_gen: v7x
topology: tpu7x:2x2x1
jax: 0.10.0
libtpu: 0.0.40
codegen_flags: <defaults>
</compile_context>

<pallas_src>
import math
from dataclasses import dataclass, field
from typing import List

import jax
import jax.numpy as jnp
from jax.experimental import pallas as pl
from jax.experimental.pallas import tpu as pltpu


# ----------------------------------------------------------------------------
# "Minute" feature engineering (plain Python glue, mirrors the PyTorch helpers)
# ----------------------------------------------------------------------------

@dataclass
class Minute:
    minute_list: List[float] = field(default_factory=list)
    operation_list: List[float] = field(default_factory=list)
    average: float = 1.0
    average_5: float = 1.0
    average_10: float = 1.0
    average_15: float = 1.0
    valoration: float = 0.0


def always_increase(price_list):
    # Original parses as `increase & (x > 0)` with x fixed at 4 and never
    # decremented, so it only terminates when price_list[4] < price_list[3]
    # (returning 0.0); otherwise it would spin forever adding 0.25.
    # TODO(synk): original loop is non-terminating on increasing tails; emulate one iteration.
    if price_list[4] >= price_list[3]:
        return 0.25
    return 0.0


def zero_div(c, d):
    if c == 0:
        return 0
    if d == 0:
        return 1
    return c / d


def evolution(l):
    return zero_div(l[4], l[0])


def evolution_from_last_price(m):
    return [m.minute_list[x + 1] / m.minute_list[x] for x in range(4)]


def evolution_for_operation(m):
    ev = evolution_from_last_price(m)
    return [zero_div(ev[x], m.operation_list[x + 1]) for x in range(4)]


def init_price_from_average(m):
    return m.minute_list[0] / m.average


def price_evolution_from_average(m):
    return m.minute_list[4] / m.average


def average_5_from_average(m):
    return m.average_5 / m.average


def average_10_from_average(m):
    return m.average_10 / m.average


def average_15_from_average(m):
    return m.average_15 / m.average


def average_5_from_average_10(m):
    return m.average_5 / m.average_10


def average_5_from_average_15(m):
    return m.average_5 / m.average_15


def average_10_from_average_15(m):
    return m.average_10 / m.average_15


def input_list_from_minute(m):
    feat = []
    feat.append(evolution(m.minute_list))
    feat.append(evolution(m.operation_list))
    feat.append(price_evolution_from_average(m))
    feat.append(init_price_from_average(m))
    feat.append(always_increase(m.minute_list))
    feat.append(always_increase(m.operation_list))
    feat += evolution_for_operation(m)
    feat += evolution_from_last_price(m)
    feat.append(average_5_from_average(m))
    feat.append(average_10_from_average(m))
    feat.append(average_15_from_average(m))
    feat.append(average_5_from_average_10(m))
    feat.append(average_5_from_average_15(m))
    feat.append(average_10_from_average_15(m))
    assert len(feat) == 20
    # Same row duplicated twice, exactly like torch.tensor([input, input]).
    return jnp.asarray([feat, feat], dtype=jnp.float32)


# ----------------------------------------------------------------------------
# Packed, tile-aligned parameter layout (single f32 slab, one DMA)
# ----------------------------------------------------------------------------
# Slab shape: (440, 256) f32
#   rows [  0: 32)  W1  padded (32, 256)   -- real data at [0:20,  0:150]
#   rows [ 32: 40)  b1  in row 32          -- real data at [32,    0:150]
#   rows [ 40:296)  W2  padded (256, 128)  -- real data at [40:190, 0:25]
#   rows [296:304)  b2  in row 296         -- real data at [296,    0:25]
#   rows [304:432)  W3  padded (128, 128)  -- real data at [304:329, 0:2]
#   rows [432:440)  b3  in row 432         -- real data at [432,     0:2]

PACK_ROWS = 440
PACK_COLS = 256

BATCH_PAD = 8      # f32 sublane minimum
IN_PAD = 32        # 20 -> 32
H1_PAD = 256       # 150 -> 256
H2_PAD = 128       # 25 -> 128
OUT_PAD = 128      # 2 -> 128 (lane-dense output; sliced in wrapper)


def pack_params(w1, b1, w2, b2, w3, b3):
    """Zero-pad and concatenate all params into one (440, 256) f32 slab."""
    p = jnp.zeros((PACK_ROWS, PACK_COLS), jnp.float32)
    p = p.at[0:20, 0:150].set(w1)            # W1 (20, 150)
    p = p.at[32, 0:150].set(b1.reshape(-1))  # b1 (150,)
    p = p.at[40:190, 0:25].set(w2)           # W2 (150, 25)
    p = p.at[296, 0:25].set(b2.reshape(-1))  # b2 (25,)
    p = p.at[304:329, 0:2].set(w3)           # W3 (25, 2)
    p = p.at[432, 0:2].set(b3.reshape(-1))   # b3 (2,)
    return p


# ----------------------------------------------------------------------------
# Pallas kernel: fused 3-layer MLP on padded tiles, all operands in VMEM
# ----------------------------------------------------------------------------

def beth_mlp_kernel(x_ref, p_ref, o_ref):
    x = x_ref[...]                               # (8, 32)

    w1 = p_ref[0:32, :]                          # (32, 256)
    b1 = p_ref[32:33, :]                         # (1, 256)
    w2 = p_ref[40:296, 0:H2_PAD]                 # (256, 128)
    b2 = p_ref[296:297, 0:H2_PAD]                # (1, 128)
    w3 = p_ref[304:432, 0:OUT_PAD]               # (128, 128)
    b3 = p_ref[432:433, 0:OUT_PAD]               # (1, 128)

    h1 = jnp.dot(x, w1, preferred_element_type=jnp.float32) + b1
    h1 = jnp.maximum(h1, 0.0)                    # (8, 256)
    h2 = jnp.dot(h1, w2, preferred_element_type=jnp.float32) + b2
    h2 = jnp.maximum(h2, 0.0)                    # (8, 128)
    o_ref[...] = jnp.dot(h2, w3, preferred_element_type=jnp.float32) + b3  # (8, 128)


def beth_forward_pallas(x, packed_params):
    """x: (batch, 20) f32; packed_params: (440, 256) f32. Returns (batch, 2)."""
    batch = x.shape[0]
    x_pad = jnp.zeros((BATCH_PAD, IN_PAD), jnp.float32).at[:batch, :20].set(x)

    vmem = pl.BlockSpec(memory_space=pltpu.MemorySpace.VMEM)
    flops = 2 * BATCH_PAD * (IN_PAD * H1_PAD + H1_PAD * H2_PAD + H2_PAD * OUT_PAD)
    bytes_accessed = 4 * (PACK_ROWS * PACK_COLS + BATCH_PAD * IN_PAD + BATCH_PAD * OUT_PAD)

    out_pad = pl.pallas_call(
        beth_mlp_kernel,
        out_shape=jax.ShapeDtypeStruct((BATCH_PAD, OUT_PAD), jnp.float32),
        in_specs=[vmem, vmem],
        out_specs=vmem,
        cost_estimate=pl.CostEstimate(
            flops=flops, transcendentals=0, bytes_accessed=bytes_accessed),
    )(x_pad, packed_params)

    return out_pad[:batch, :2]


# ----------------------------------------------------------------------------
# Deterministic parameter init (PyTorch nn.Linear default: U(-1/sqrt(in), 1/sqrt(in)))
# ----------------------------------------------------------------------------

def init_linear(key, fan_in, fan_out):
    kw, kb = jax.random.split(key)
    bound = 1.0 / math.sqrt(fan_in)
    # Stored transposed: (in, out).
    w = jax.random.uniform(kw, (fan_in, fan_out), jnp.float32, -bound, bound)
    b = jax.random.uniform(kb, (1, fan_out), jnp.float32, -bound, bound)
    return w, b


def beth_reference(x, w1, b1, w2, b2, w3, b3):
    h1 = jnp.maximum(x @ w1 + b1, 0.0)
    h2 = jnp.maximum(h1 @ w2 + b2, 0.0)
    return h2 @ w3 + b3


if __name__ == "__main__":
    root = jax.random.PRNGKey(0)
    k_params, k_data = jax.random.split(root)
    k1, k2, k3 = jax.random.split(k_params, 3)

    w1, b1 = init_linear(k1, 20, 150)
    w2, b2 = init_linear(k2, 150, 25)
    w3, b3 = init_linear(k3, 25, 2)
    packed = pack_params(w1, b1, w2, b2, w3, b3)

    # Deterministic synthetic "minute": random positive prices/volumes, then
    # force a decreasing tail so always_increase terminates in the original code.
    vals = jax.random.uniform(k_data, (14,), jnp.float32, 0.5, 1.5)
    mv = [float(v) for v in vals[:5]]
    ov = [float(v) * 100.0 for v in vals[5:10]]
    mv[4] = mv[3] * 0.95          # decreasing tail -> always_increase == 0.0
    ov[4] = ov[3] * 0.90

    minute = Minute(
        minute_list=mv,
        operation_list=ov,
        average=float(vals[10]) + 0.5,
        average_5=float(vals[11]) + 0.5,
        average_10=float(vals[12]) + 0.5,
        average_15=float(vals[13]) + 0.5,
        valoration=1.0,
    )

    x = input_list_from_minute(minute)          # (2, 20) float32

    out = beth_forward_pallas(x, packed)
    out = jax.block_until_ready(out)

    ref = beth_reference(x, w1, b1, w2, b2, w3, b3)
    assert out.shape == (2, 2)
    assert jnp.allclose(out, ref, atol=1e-5, rtol=1e-5)

    print("KERNEL_OK")
</pallas_src>

<mosaic_0001>
module attributes {stable_mosaic.version = 11 : i64} {
  func.func @beth_mlp_kernel(%arg0: memref<8x32xf32, #tpu.memory_space<vmem>>, %arg1: memref<440x256xf32, #tpu.memory_space<vmem>>, %arg2: memref<8x128xf32, #tpu.memory_space<vmem>>) attributes {dimension_semantics = [], scalar_prefetch = 0 : i64, scratch_operands = 0 : i64, tpu.core_type = #tpu.core_type<tc>} {
    %c0 = arith.constant 0 : index
    %c0_0 = arith.constant 0 : index
    %0 = vector.load %arg0[%c0, %c0_0] : memref<8x32xf32, #tpu.memory_space<vmem>>, vector<8x32xf32>
    %c0_1 = arith.constant 0 : index
    %c0_2 = arith.constant 0 : index
    %1 = vector.load %arg1[%c0_1, %c0_2] : memref<440x256xf32, #tpu.memory_space<vmem>>, vector<32x256xf32>
    %c32 = arith.constant 32 : index
    %c0_3 = arith.constant 0 : index
    %2 = vector.load %arg1[%c32, %c0_3] : memref<440x256xf32, #tpu.memory_space<vmem>>, vector<1x256xf32>
    %c40 = arith.constant 40 : index
    %c0_4 = arith.constant 0 : index
    %3 = vector.load %arg1[%c40, %c0_4] : memref<440x256xf32, #tpu.memory_space<vmem>>, vector<256x128xf32>
    %c296 = arith.constant 296 : index
    %c0_5 = arith.constant 0 : index
    %4 = vector.load %arg1[%c296, %c0_5] : memref<440x256xf32, #tpu.memory_space<vmem>>, vector<1x128xf32>
    %c304 = arith.constant 304 : index
    %c0_6 = arith.constant 0 : index
    %5 = vector.load %arg1[%c304, %c0_6] : memref<440x256xf32, #tpu.memory_space<vmem>>, vector<128x128xf32>
    %c432 = arith.constant 432 : index
    %c0_7 = arith.constant 0 : index
    %6 = vector.load %arg1[%c432, %c0_7] : memref<440x256xf32, #tpu.memory_space<vmem>>, vector<1x128xf32>
    %cst = arith.constant dense<0.000000e+00> : vector<8x256xf32>
    %7 = tpu.matmul %0, %1, %cst {dimension_numbers = #tpu.dot_dimension_numbers<[1], [0], [0], [1], [0, 0, 1, 1], [], []>} : vector<8x32xf32>, vector<32x256xf32>, vector<8x256xf32> -> vector<8x256xf32>
    %8 = vector.broadcast %2 : vector<1x256xf32> to vector<8x256xf32>
    %9 = arith.addf %7, %8 : vector<8x256xf32>
    %cst_8 = arith.constant 0.000000e+00 : f32
    %10 = vector.broadcast %cst_8 : f32 to vector<8x256xf32>
    %11 = arith.maximumf %9, %10 : vector<8x256xf32>
    %cst_9 = arith.constant dense<0.000000e+00> : vector<8x128xf32>
    %12 = tpu.matmul %11, %3, %cst_9 {dimension_numbers = #tpu.dot_dimension_numbers<[1], [0], [0], [1], [0, 0, 1, 1], [], []>} : vector<8x256xf32>, vector<256x128xf32>, vector<8x128xf32> -> vector<8x128xf32>
    %13 = vector.broadcast %4 : vector<1x128xf32> to vector<8x128xf32>
    %14 = arith.addf %12, %13 : vector<8x128xf32>
    %cst_10 = arith.constant 0.000000e+00 : f32
    %15 = vector.broadcast %cst_10 : f32 to vector<8x128xf32>
    %16 = arith.maximumf %14, %15 : vector<8x128xf32>
    %cst_11 = arith.constant dense<0.000000e+00> : vector<8x128xf32>
    %17 = tpu.matmul %16, %5, %cst_11 {dimension_numbers = #tpu.dot_dimension_numbers<[1], [0], [0], [1], [0, 0, 1, 1], [], []>} : vector<8x128xf32>, vector<128x128xf32>, vector<8x128xf32> -> vector<8x128xf32>
    %18 = vector.broadcast %6 : vector<1x128xf32> to vector<8x128xf32>
    %19 = arith.addf %17, %18 : vector<8x128xf32>
    %c0_12 = arith.constant 0 : index
    %c0_13 = arith.constant 0 : index
    %20 = vector.load %arg2[%c0_12, %c0_13] : memref<8x128xf32, #tpu.memory_space<vmem>>, vector<8x128xf32>
    tpu.vector_store %arg2[%c0_12, %c0_13], %19 {strides = array<i32>} : memref<8x128xf32, #tpu.memory_space<vmem>>, vector<8x128xf32>,
    return
  }
}

</mosaic_0001>

<bundles_post_ra>
// kernel: tpu_custom_call.1
= control target key start
LH: loop header
LB: loop body
LE: loop exit
PB: predicated region body
PF: predicated region fallthrough
CT: control target
= control target key end

     0   :  { %7 = vsyncpa [#allocation3], 0  ;;  %s645_s0 = inlined_call_operand.hbm [shape: f32[8,32], index: 0, kind: input, shape index: {}]   ;;  %s646_s1 = inlined_call_operand.hbm [shape: f32[440,256], index: 1, kind: input, shape index: {}]   ;;  %s647_s2 = inlined_call_operand.hbm [shape: f32[8,128], index: 2, kind: output, shape index: {}]  }
   0x1   :  { %8 = vsyncpa [#allocation6], 0 }
   0x2   :  { %9 = vsyncpa [#allocation4], 0  ;;  %s577_s9 = smov [#allocation2]   ;;  %s578_s11 = smov [#allocation5]  }
   0x3   :  { %s16_s10 = sshll.u32 %s577_s9, 4  ;;  %s25_s12 = sshll.u32 %s578_s11, 4  ;;  %s17_s10 = int_to_ptr.vmem [resolvable:$true] %s16_s10  ;;  %s600_s12 = int_to_ptr.vmem [resolvable:$true] %s25_s12 }
   0x4   :  { %s505_s15 = scalar_lea.hbm %s645_s0, 128 }
   0x5   :  { %p506_p0 = scmp.ne.s32.totalorder %s645_s0, %s505_s15  ;;  %p509_p1 = scmp.lt.u32.totalorder %s505_s15, %s645_s0 }
   0x7   :  { %p511_p2 = pnand %p509_p1, %p506_p0 }
   0x9   :  { %514 = shalt.err (!%p511_p2)
}
   0xa   :  { %s515_s20 = scalar_lea.vmem %s17_s10, 128  ;;  %p520_p4 = scmp.lt.s32.totalorder %s17_s10, %s17_s10 }
   0xb   :  { %p516_p3 = scmp.ne.s32.totalorder %s17_s10, %s515_s20  ;;  %p521_p5 = scmp.lt.s32.totalorder %s515_s20, %s515_s20 }
   0xd   :  { %p522_p6 = por %p521_p5, %p520_p4 }
   0xf   :  { %p523_p7 = pnand %p522_p6, %p516_p3 }
  0x11   :  { %526 = shalt.err (!%p523_p7)
}
  0x12   :  { %19 = dma.hbm_to_vmem [thread:$0]  %s645_s0, 128, %s17_s10, [#allocation3]  }
  0x13   :  { %s527_s25 = scalar_lea.hbm %s646_s1, 14080 }
  0x14   :  { %p528_p8 = scmp.ne.s32.totalorder %s646_s1, %s527_s25  ;;  %p531_p9 = scmp.lt.u32.totalorder %s527_s25, %s646_s1 }
  0x16   :  { %p533_p10 = pnand %p531_p9, %p528_p8 }
  0x18   :  { %536 = shalt.err (!%p533_p10)
}
  0x19   :  { %s537_s30 = scalar_lea.vmem %s600_s12, 14080  ;;  %p542_p12 = scmp.lt.s32.totalorder %s600_s12, %s600_s12 }
  0x1a   :  { %p538_p11 = scmp.ne.s32.totalorder %s600_s12, %s537_s30  ;;  %p543_p13 = scmp.lt.s32.totalorder %s537_s30, %s537_s30 }
  0x1c   :  { %p544_p0 = por %p543_p13, %p542_p12 }
  0x1e   :  { %p545_p1 = pnand %p544_p0, %p538_p11 }
  0x20   :  { %548 = shalt.err (!%p545_p1)
}
  0x21   :  { %s579_s0 = smov 256   ;;  %s580_s3 = smov 16  }
  0x22   :  { %31 = dma.hbm_to_vmem [thread:$0]  %s646_s1, 14080, %s600_s12, [#allocation6], %s579_s0, %s579_s0, %s580_s3  }
  0x23   :  { %571 = dma.done.wait [#allocation3], 128  }
  0x24   :  { %572 = vsyncadd [#allocation3], 4294967168 }
  0x25   :  { %573 = dma.done.wait [#allocation6], 14080  }
  0x26   :  { %574 = vsyncadd [#allocation6], 4294953216  ;;  %v581_v0 = vmov 0.0   ;;  %v40_v1 = vld [vmem:[#allocation5 + $0x8] sm:$0xff]  ;;  %v42_v2 = vld [vmem:[#allocation5 + $0x18] sm:$0xff]  ;;  %vm110_vm0 = vcmask 261120  }
  0x27   :  { %178 = vmatprep.mubr.f32.mxu0 %v581_v0  ;;  %v39_v3 = vld [vmem:[#allocation5] sm:$0xff]  ;;  %v433_v4 = vpack.c.bf16 %v42_v2, %v40_v1  ;;  %v41_v5 = vld [vmem:[#allocation5 + $0x10] sm:$0xff]  ;;  %v44_v6 = vld [vmem:[#allocation5 + $0x28] sm:$0xff]  ;;  %v582_v2 = vmov 0.0|0.0   ;;  %vm583_vm1 = vmmov 0   ;;  %s584_s1 = smov [#allocation7]  }
  0x28   :  { %v46_v7 = vld [vmem:[#allocation5 + $0x38] sm:$0xff]  ;;  %v435_v8 = vpack.c.bf16 %v41_v5, %v39_v3  ;;  %v43_v10 = vld [vmem:[#allocation5 + $0x20] sm:$0xff]  ;;  %v45_v11 = vld [vmem:[#allocation5 + $0x30] sm:$0xff]  ;;  %s335_s6 = sshll.u32 %s584_s1, 4  ;;  %s336_s6 = int_to_ptr.vmem [resolvable:$true] %s335_s6 }
  0x29   :  { %v437_v9 = vpack.c.bf16 %v46_v7, %v44_v6  ;;  %434 = vmatprep.subr.bf16.mxu0 %v433_v4  ;;  %v65_v12 = vld [vmem:[#allocation5 + $0x150] sm:$0xff]  ;;  %v66_v13 = vld [vmem:[#allocation5 + $0x160] sm:$0xff]  ;;  %v439_v15 = vpack.c.bf16 %v45_v11, %v43_v10  ;;  %v38_v27 = vld [vmem:[#allocation2] sm:$0xff]  ;;  %s549_s7 = scalar_lea.vmem %s336_s6, 128  ;;  %p554_p3 = scmp.lt.s32.totalorder %s336_s6, %s336_s6 }
  0x2a   :  { %v49_v14 = vld [vmem:[#allocation5 + $0x50] sm:$0xff]  ;;  %436 = vmatpush1.bf16.msra.mxu0 %v435_v8  ;;  %v441_v16 = vpack.c.bf16 %v66_v13, %v65_v12  ;;  %v50_v17 = vld [vmem:[#allocation5 + $0x60] sm:$0xff]  ;;  %p550_p2 = scmp.ne.s32.totalorder %s336_s6, %s549_s7  ;;  %p555_p4 = scmp.lt.s32.totalorder %s549_s7, %s549_s7 }
  0x2b   :  { %v67_v18 = vld [vmem:[#allocation5 + $0x170] sm:$0xff]  ;;  %v68_v19 = vld [vmem:[#allocation5 + $0x180] sm:$0xff]  ;;  %438 = vmatprep.subr.bf16.mxu0 %v437_v9  ;;  %v443_v20 = vpack.c.bf16 %v50_v17, %v49_v14 }
  0x2c   :  { %v445_v21 = vpack.c.bf16 %v68_v19, %v67_v18  ;;  %v51_v22 = vld [vmem:[#allocation5 + $0x70] sm:$0xff]  ;;  %v52_v23 = vld [vmem:[#allocation5 + $0x80] sm:$0xff]  ;;  %442 = vmatprep.subr.bf16.mxu1 %v441_v16  ;;  %v100_v18 = vlaneseq  ;;  %p556_p5 = por %p555_p4, %p554_p3 }
  0x2d   :  { %v69_v24 = vld [vmem:[#allocation5 + $0x190] sm:$0xff]  ;;  %v70_v25 = vld [vmem:[#allocation5 + $0x1a0] sm:$0xff]  ;;  %444 = vmatpush3.bf16.msra.mxu1 %v443_v20  ;;  %v447_v26 = vpack.c.bf16 %v52_v23, %v51_v22 }
  0x2e   :  { %440 = vmatpush1.bf16.msra.mxu0 %v439_v15  ;;  %446 = vmatprep.subr.bf16.mxu1 %v445_v21  ;;  %v449_v28 = vpack.c.bf16 %v70_v25, %v69_v24  ;;  %v53_v29 = vld [vmem:[#allocation5 + $0x90] sm:$0xff]  ;;  %v54_v30 = vld [vmem:[#allocation5 + $0xa0] sm:$0xff]  ;;  %v101_v19 = vshrl.u32 %v100_v18, 7  ;;  %p557_p6 = pnand %p556_p5, %p550_p2 }
  0x2f   :  { %v71_v31 = vld [vmem:[#allocation5 + $0x1b0] sm:$0xff]  ;;  %v72_v32 = vld [vmem:[#allocation5 + $0x1c0] sm:$0xff]  ;;  %v451_v33 = vpack.c.bf16 %v54_v30, %v53_v29  ;;  %473 = vmatprep.subr.bf16.mxu0 %v582_v2 }
  0x30   :  { %v453_v34 = vpack.c.bf16 %v72_v32, %v71_v31  ;;  %v55_v35 = vld [vmem:[#allocation5 + $0xb0] sm:$0xff]  ;;  %v56_v36 = vld [vmem:[#allocation5 + $0xc0] sm:$0xff]  ;;  %v102_v20 = vsub.s32 0, %v101_v19  ;;  %v106_v22 = vsub.s32 1, %v101_v19 }
  0x31   :  { %345 = vmatmul.mubr.msk.f32.vlgmr.msra.gmra.mrb[0].mxu0 %vm110_vm0, %v38_v27  ;;  %448 = vmatpush3.bf16.msra.mxu1 %v447_v26  ;;  %v73_v37 = vld [vmem:[#allocation5 + $0x1d0] sm:$0xff]  ;;  %v74_v38 = vld [vmem:[#allocation5 + $0x1e0] sm:$0xff]  ;;  %v455_v39 = vpack.c.bf16 %v56_v36, %v55_v35 }
  0x32   :  { %450 = vmatprep.subr.bf16.mxu1 %v449_v28  ;;  %v457_v40 = vpack.c.bf16 %v74_v38, %v73_v37  ;;  %v57_v41 = vld [vmem:[#allocation5 + $0xd0] sm:$0xff]  ;;  %v58_v42 = vld [vmem:[#allocation5 + $0xe0] sm:$0xff]  ;;  %430 = vmatprep.mubr.msk.f32.mxu0 %vm583_vm1, %v581_v0 }
  0x33   :  { %v75_v43 = vld [vmem:[#allocation5 + $0x1f0] sm:$0xff]  ;;  %v76_v44 = vld [vmem:[#allocation5 + $0x200] sm:$0xff]  ;;  %v459_v45 = vpack.c.bf16 %v58_v42, %v57_v41 }
  0x34   :  { %v461_v46 = vpack.c.bf16 %v76_v44, %v75_v43  ;;  %v59_v47 = vld [vmem:[#allocation5 + $0xf0] sm:$0xff]  ;;  %v60_v48 = vld [vmem:[#allocation5 + $0x100] sm:$0xff] }
  0x35   :  { %452 = vmatpush3.bf16.msra.mxu1 %v451_v33  ;;  %v77_v49 = vld [vmem:[#allocation5 + $0x210] sm:$0xff]  ;;  %v78_v50 = vld [vmem:[#allocation5 + $0x220] sm:$0xff]  ;;  %v463_v51 = vpack.c.bf16 %v60_v48, %v59_v47 }
  0x36   :  { %454 = vmatprep.subr.bf16.mxu1 %v453_v34  ;;  %v465_v52 = vpack.c.bf16 %v78_v50, %v77_v49  ;;  %v61_v53 = vld [vmem:[#allocation5 + $0x110] sm:$0xff]  ;;  %v62_v54 = vld [vmem:[#allocation5 + $0x120] sm:$0xff] }
  0x37   :  { %v467_v55 = vpack.c.bf16 %v62_v54, %v61_v53  ;;  %v79_v56 = vld [vmem:[#allocation5 + $0x230] sm:$0xff]  ;;  %v80_v57 = vld [vmem:[#allocation5 + $0x240] sm:$0xff] }
  0x38   :  { %v469_v58 = vpack.c.bf16 %v80_v57, %v79_v56  ;;  %v63_v59 = vld [vmem:[#allocation5 + $0x130] sm:$0xff]  ;;  %v64_v60 = vld [vmem:[#allocation5 + $0x140] sm:$0xff] }
  0x39   :  { %456 = vmatpush3.bf16.msra.mxu1 %v455_v39  ;;  %v471_v61 = vpack.c.bf16 %v64_v60, %v63_v59  ;;  %v82_v62 = vld [vmem:[#allocation5 + $0x260] sm:$0xff]  ;;  %v83_v63 = vld [vmem:[#allocation5 + $0x270] sm:$0xff] }
  0x3a   :  { %458 = vmatprep.subr.bf16.mxu1 %v457_v40  ;;  %v84_v1 = vld [vmem:[#allocation5 + $0x280] sm:$0xff]  ;;  %v474_v3 = vpack.c.bf16 %v83_v63, %v82_v62  ;;  %v85_v4 = vld [vmem:[#allocation5 + $0x290] sm:$0xff] }
  0x3b   :  { %v477_v5 = vpack.c.bf16 %v85_v4, %v84_v1  ;;  %v86_v6 = vld [vmem:[#allocation5 + $0x2a0] sm:$0xff]  ;;  %v87_v7 = vld [vmem:[#allocation5 + $0x2b0] sm:$0xff] }
  0x3c   :  { %475 = vmatpush3.bf16.msra.mxu0 %v474_v3  ;;  %v480_v8 = vpack.c.bf16 %v87_v7, %v86_v6  ;;  %v88_v9 = vld [vmem:[#allocation5 + $0x2c0] sm:$0xff]  ;;  %v89_v10 = vld [vmem:[#allocation5 + $0x2d0] sm:$0xff] }
  0x3d   :  { %460 = vmatpush3.bf16.msra.mxu1 %v459_v45  ;;  %476 = vmatprep.subr.bf16.mxu0 %v582_v2  ;;  %v483_v11 = vpack.c.bf16 %v89_v10, %v88_v9  ;;  %v90_v12 = vld [vmem:[#allocation5 + $0x2e0] sm:$0xff]  ;;  %v91_v13 = vld [vmem:[#allocation5 + $0x2f0] sm:$0xff] }
  0x3e   :  { %462 = vmatprep.subr.bf16.mxu1 %v461_v46  ;;  %v486_v14 = vpack.c.bf16 %v91_v13, %v90_v12  ;;  %v92_v15 = vld [vmem:[#allocation5 + $0x300] sm:$0xff]  ;;  %v93_v16 = vld [vmem:[#allocation5 + $0x310] sm:$0xff] }
  0x3f   :  { %v489_v17 = vpack.c.bf16 %v93_v16, %v92_v15  ;;  %v48_v21 = vld [vmem:[#allocation5 + $0x40] ss:$8 sm:$0x3]  ;;  %v95_v32 = vld [vmem:[#allocation5 + $0x330] sm:$0xff] }
  0x40   :  { %478 = vmatpush3.bf16.msra.mxu0 %v477_v5  ;;  %v103_v23 = vrot.slane %v48_v21, %v102_v20  ;;  %v107_v24 = vrot.slane %v48_v21, %v106_v22  ;;  %v94_v31 = vld [vmem:[#allocation5 + $0x320] sm:$0xff]  ;;  %v97_v35 = vld [vmem:[#allocation5 + $0x350] sm:$0xff] }
  0x41   :  { %464 = vmatpush3.bf16.msra.mxu1 %v463_v51  ;;  %479 = vmatprep.subr.bf16.mxu0 %v582_v2  ;;  %v492_v33 = vpack.c.bf16 %v95_v32, %v94_v31  ;;  %v96_v34 = vld [vmem:[#allocation5 + $0x340] sm:$0xff]  ;;  %v81_v38 = vld [vmem:[#allocation5 + $0x250] ss:$0 sm:$0xff] }
  0x42   :  { %466 = vmatprep.subr.bf16.mxu1 %v465_v52  ;;  %v495_v36 = vpack.c.bf16 %v97_v35, %v96_v34  ;;  %v98_v43 = vld [vmem:[#allocation5 + $0x360] ss:$0 sm:$0xff] }
  0x44   :  { %481 = vmatpush3.bf16.msra.mxu0 %v480_v8 }
  0x45   :  { %468 = vmatpush3.bf16.msra.mxu1 %v467_v55  ;;  %482 = vmatprep.subr.bf16.mxu0 %v582_v2 }
  0x46   :  { %470 = vmatprep.subr.bf16.mxu1 %v469_v58 }
  0x48   :  { %484 = vmatpush3.bf16.msra.mxu0 %v483_v11 }
  0x49   :  { %472 = vmatpush3.bf16.msra.mxu1 %v471_v61  ;;  %485 = vmatprep.subr.bf16.mxu0 %v582_v2 }
  0x4c   :  { %487 = vmatpush3.bf16.msra.mxu0 %v486_v14 }
  0x4d   :  { %488 = vmatprep.subr.bf16.mxu0 %v582_v2 }
  0x50   :  { %490 = vmatpush3.bf16.msra.mxu0 %v489_v17 }
  0x51   :  { %491 = vmatprep.subr.bf16.mxu0 %v582_v2 }
  0x54   :  { %493 = vmatpush3.bf16.msra.mxu0 %v492_v33 }
  0x55   :  { %494 = vmatprep.subr.bf16.mxu0 %v582_v2 }
  0x58   :  { %496 = vmatpush3.bf16.msra.mxu0 %v495_v36 }
 0x104   :  { %v180_v25 = vpop.f32.mrb[0].mxu0 }
 0x105   :  { %v181_v26 = vadd.f32 %v180_v25, %v103_v23  ;;  %v182_v27 = vpop.f32.mrb[1].mxu0 }
 0x106   :  { %v183_v28 = vadd.f32 %v182_v27, %v107_v24 }
 0x107   :  { %v185_v30 = vmax.f32 %v181_v26, 0.0 }
 0x108   :  { %v186_v29 = vmax.f32 %v183_v28, 0.0 }
 0x10a   :  { %251 = vmatprep.mubr.f32.mxu1 %v186_v29 }
 0x10b   :  { %252 = vmatmul.mubr.f32.vlgmr.msra.gmra.mrb[0].mxu1 %v185_v30 }
 0x1de   :  { %v378_v37 = vpop.f32.mrb[0].mxu1 }
 0x1df   :  { %v379_v39 = vpop.f32.mrb[1].mxu1 }
 0x1e0   :  { %v380_v40 = vadd.f32 %v379_v39, %v378_v37 }
 0x1e2   :  { %v254_v41 = vadd.f32 %v380_v40, %v81_v38 }
 0x1e4   :  { %v257_v42 = vmax.f32 %v254_v41, 0.0 }
 0x1e6   :  { %431 = vmatmul.mubr.f32.vlgmr.msra.gmra.mrb[2].mxu0 %v257_v42 }
 0x2b9   :  { %v324_v44 = vpop.f32.mrb[2].mxu0 }
 0x2ba   :  { %v325_v45 = vadd.f32 %v324_v44, %v98_v43  ;;  %v432_v46 = vpop.f32.mrb[3].mxu0 }
 0x2bc   :  { %328 = vst [vmem:[#allocation7] sm:$0xff] %v325_v45 }
 0x2bd   :  { %560 = shalt.err (!%p557_p6)
}
 0x2be   :  { %s561_s10 = scalar_lea.hbm %s647_s2, 128 }
 0x2bf   :  { %p562_p7 = scmp.ne.s32.totalorder %s647_s2, %s561_s10  ;;  %p565_p8 = scmp.lt.u32.totalorder %s561_s10, %s647_s2 }
 0x2c1   :  { %p567_p9 = pnand %p565_p8, %p562_p7 }
 0x2c3   :  { %570 = shalt.err (!%p567_p9)
}
 0x2c4   :  { %338 = dma.vmem_to_hbm [thread:$0]  %s336_s6, 128, %s647_s2, [#allocation4]  }
 0x2c5   :  { %575 = dma.done.wait [#allocation4], 128  }
 0x2c6   :  { %576 = vsyncadd [#allocation4], 4294967168 }
 0x2c7   :  { %342 = vsyncpa [#allocation3], 1 }
 0x2c8   :  { %343 = vsyncpa [#allocation6], 1 }
 0x2c9   :  { %344 = vsyncpa [#allocation4], 1 }

</bundles_post_ra>
